<compile_context>
chip_gen: v7x
topology: tpu7x:2x2x1
jax: 0.10.0
libtpu: 0.0.40
codegen_flags: <defaults>
</compile_context>

<pallas_src>
import functools

import jax
import jax.numpy as jnp
from jax.experimental import pallas as pl
from jax.experimental.pallas import tpu as pltpu

# Activation chosen for this synthetic instantiation of MLP(layer_size, activation).
ACTIVATION = "tanh"

_LANE = 128
_SUBLANE = 8
# Conservative budget for the "weights resident" fused path (v7x: 64 MiB phys,
# 32 MiB default scoped; v5e: 16 MiB default scoped).
_FUSED_VMEM_BUDGET_BYTES = 16 * 1024 * 1024
# Batch-tile cap for the fused path (rows per grid step).
_MAX_FUSED_BATCH_TILE = 512


def _round_up(x, m):
    return ((x + m - 1) // m) * m


def _pad2d(a, rows, cols):
    pr, pc = rows - a.shape[0], cols - a.shape[1]
    if pr == 0 and pc == 0:
        return a
    return jnp.pad(a, ((0, pr), (0, pc)))


def _apply_activation(y, name):
    if name == "relu":
        return jnp.maximum(y, 0.0)
    if name == "tanh":
        return jnp.tanh(y)
    if name == "sigmoid":
        return jax.nn.sigmoid(y)
    if name == "elu":
        return jnp.where(y > 0, y, jnp.expm1(y))
    if name == "selu":
        alpha = 1.6732632423543772
        scale = 1.0507009873554805
        return scale * jnp.where(y > 0, y, alpha * jnp.expm1(y))
    if name == "leaky":
        return jnp.where(y > 0, y, 0.01 * y)
    if name == "sin":
        return jnp.sin(y)
    if name == "softplus":
        return jax.nn.softplus(y)
    if name == "gelu":
        return jax.nn.gelu(y)
    if name == "silu":
        return y * jax.nn.sigmoid(y)
    if name == "Mish":
        return y * jnp.tanh(jax.nn.softplus(y))
    # TODO(synk): 'Rrelu' (nn.RReLU) samples a random slope in training mode;
    # eval-mode equivalent is LeakyReLU with slope (1/8 + 1/3)/2.
    if name == "Rrelu":
        return jnp.where(y > 0, y, ((1.0 / 8.0 + 1.0 / 3.0) / 2.0) * y)
    raise ValueError(f"unknown activation {name}")


# ----------------------------------------------------------------------------- #
# Fused path: whole MLP in a single pallas_call, weights resident, batch tiled.
# ----------------------------------------------------------------------------- #
def _fused_mlp_kernel(*refs, n_layers, activation):
    # refs = (x, w0, b0, w1, b1, ..., w_{n-1}, b_{n-1}, out)
    x_ref = refs[0]
    o_ref = refs[1 + 2 * n_layers]
    y = x_ref[...]                       # (tb, D0_pad) f32, lives in VMEM/vregs
    for k in range(n_layers):            # static unrolled layer loop
        w_ref = refs[1 + 2 * k]
        b_ref = refs[2 + 2 * k]
        y = jnp.dot(y, w_ref[...], preferred_element_type=jnp.float32) + b_ref[...]
        if k < n_layers - 1:             # last Linear has no activation
            y = _apply_activation(y, activation)
    o_ref[...] = y.astype(o_ref.dtype)


def mlp_forward_fused(x, params, activation, *, tb=None):
    B, D0 = x.shape
    n = len(params)
    dims = [D0] + [w.shape[1] for (w, _) in params]
    dims_pad = [_round_up(d, _LANE) for d in dims]   # lane-dense feature dims

    if tb is None:
        tb = min(_round_up(B, _SUBLANE), _MAX_FUSED_BATCH_TILE)
    tb = _round_up(tb, _SUBLANE)
    B_pad = _round_up(B, tb)

    inputs = [_pad2d(x, B_pad, dims_pad[0])]
    in_specs = [pl.BlockSpec((tb, dims_pad[0]), lambda i: (i, 0))]
    for k, (w, b) in enumerate(params):
        inputs.append(_pad2d(w, dims_pad[k], dims_pad[k + 1]))
        # Constant block index -> weight/bias DMA'd into VMEM exactly once and
        # stays resident for every batch tile.
        in_specs.append(
            pl.BlockSpec((dims_pad[k], dims_pad[k + 1]), lambda i: (0, 0)))
        inputs.append(_pad2d(b.reshape(1, -1), 1, dims_pad[k + 1]))
        in_specs.append(pl.BlockSpec((1, dims_pad[k + 1]), lambda i: (0, 0)))

    kernel = functools.partial(_fused_mlp_kernel, n_layers=n, activation=activation)
    out = pl.pallas_call(
        kernel,
        out_shape=jax.ShapeDtypeStruct((B_pad, dims_pad[-1]), x.dtype),
        grid=(B_pad // tb,),
        in_specs=in_specs,
        out_specs=pl.BlockSpec((tb, dims_pad[-1]), lambda i: (i, 0)),
        compiler_params=pltpu.CompilerParams(
            dimension_semantics=("parallel",),
            vmem_limit_bytes=32 * 1024 * 1024),
    )(*inputs)
    return out[:B, :dims[-1]]


# ----------------------------------------------------------------------------- #
# Tiled path: per-layer (tm, tn, tk) matmul with f32 VMEM accumulator.
# ----------------------------------------------------------------------------- #
def _tiled_linear_kernel(x_ref, w_ref, b_ref, o_ref, acc_ref, *, activation):
    @pl.when(pl.program_id(2) == 0)
    def _init():
        acc_ref[...] = jnp.zeros_like(acc_ref)

    acc_ref[...] += jnp.dot(x_ref[...], w_ref[...],
                            preferred_element_type=jnp.float32)

    @pl.when(pl.program_id(2) == pl.num_programs(2) - 1)
    def _finalize():
        y = acc_ref[...] + b_ref[...]
        if activation is not None:
            y = _apply_activation(y, activation)
        o_ref[...] = y.astype(o_ref.dtype)


def linear_layer_tiled(x, w, b, activation=None, *, tm=256, tn=512, tk=512):
    """y = act(x @ w + b) with a real M/N/K grid (safe for large layers on v7x)."""
    B, Din = x.shape
    Din2, Dout = w.shape
    assert Din == Din2

    tm = min(tm, _round_up(B, _SUBLANE))
    tn = min(tn, _round_up(Dout, _LANE))
    tk = min(tk, _round_up(Din, _LANE))
    B_pad = _round_up(B, tm)
    N_pad = _round_up(Dout, tn)
    K_pad = _round_up(Din, tk)

    x_pad = _pad2d(x, B_pad, K_pad)
    w_pad = _pad2d(w, K_pad, N_pad)
    b_pad = _pad2d(b.reshape(1, Dout), 1, N_pad)

    kernel = functools.partial(_tiled_linear_kernel, activation=activation)
    out = pl.pallas_call(
        kernel,
        out_shape=jax.ShapeDtypeStruct((B_pad, N_pad), x.dtype),
        grid=(B_pad // tm, N_pad // tn, K_pad // tk),
        in_specs=[
            pl.BlockSpec((tm, tk), lambda i, j, k: (i, k)),
            pl.BlockSpec((tk, tn), lambda i, j, k: (k, j)),
            pl.BlockSpec((1, tn), lambda i, j, k: (0, j)),
        ],
        out_specs=pl.BlockSpec((tm, tn), lambda i, j, k: (i, j)),
        scratch_shapes=[pltpu.VMEM((tm, tn), jnp.float32)],
        compiler_params=pltpu.CompilerParams(
            dimension_semantics=("parallel", "parallel", "arbitrary"),
            vmem_limit_bytes=32 * 1024 * 1024),
    )(x_pad, w_pad, b_pad)
    return out[:B, :Dout]


def mlp_forward_tiled(x, params, activation):
    y = x
    n = len(params)
    for k, (w, b) in enumerate(params):
        act = activation if k < n - 1 else None
        y = linear_layer_tiled(y, w, b, activation=act)
    return y


# ----------------------------------------------------------------------------- #
# Dispatch / init / reference
# ----------------------------------------------------------------------------- #
def _fused_footprint_bytes(tb, dims):
    dp = [_round_up(d, _LANE) for d in dims]
    # double-buffered x tile + out tile, ~2 live intermediate tiles, resident W/b.
    n_elems = 2 * tb * dp[0] + 2 * tb * dp[-1] + 2 * tb * max(dp)
    for k in range(len(dp) - 1):
        n_elems += dp[k] * dp[k + 1] + dp[k + 1]
    return 4 * n_elems   # f32


def mlp_forward(x, params, activation=ACTIVATION, force_tiled=False):
    dims = [x.shape[1]] + [w.shape[1] for (w, _) in params]
    tb = min(_round_up(x.shape[0], _SUBLANE), _MAX_FUSED_BATCH_TILE)
    if force_tiled or _fused_footprint_bytes(tb, dims) > _FUSED_VMEM_BUDGET_BYTES:
        return mlp_forward_tiled(x, params, activation)
    return mlp_forward_fused(x, params, activation, tb=tb)


mlp_forward_jit = jax.jit(mlp_forward, static_argnames=("activation", "force_tiled"))


def init_mlp_params(key, layer_size):
    """Xavier-normal weights, zero biases (matches MLP._init_weights)."""
    params = []
    for k in range(len(layer_size) - 1):
        fan_in, fan_out = layer_size[k], layer_size[k + 1]
        key, sub = jax.random.split(key)
        std = (2.0 / (fan_in + fan_out)) ** 0.5
        # PyTorch stores weight as (out, in); we keep the transposed (in, out) layout.
        w = std * jax.random.normal(sub, (fan_in, fan_out), dtype=jnp.float32)
        b = jnp.zeros((fan_out,), dtype=jnp.float32)
        params.append((w, b))
    return params


def mlp_reference(x, params, activation=ACTIVATION):
    y = x
    n = len(params)
    for k, (w, b) in enumerate(params):
        y = jnp.dot(y, w, precision=jax.lax.Precision.HIGHEST) + b
        if k < n - 1:
            y = _apply_activation(y, activation)
    return y


if __name__ == "__main__":
    key = jax.random.PRNGKey(0)

    # --- small MLP: fused single-kernel path (single batch tile) ------------
    layer_size = [16, 32, 32, 8]          # e.g. MLP([16, 32, 32, 8], 'tanh')
    batch = 8
    key, kx = jax.random.split(key)
    x = jax.random.normal(kx, (batch, layer_size[0]), dtype=jnp.float32)
    key, kp = jax.random.split(key)
    params = init_mlp_params(kp, layer_size)

    out = jax.block_until_ready(mlp_forward_jit(x, params))
    ref = mlp_reference(x, params)
    assert out.shape == (batch, layer_size[-1])
    assert jnp.allclose(out, ref, atol=1e-5, rtol=1e-5), "fused path mismatch"

    # --- fused path with batch tiling (weights resident across grid steps) --
    batch_mt = 40
    key, kx_mt = jax.random.split(key)
    x_mt = jax.random.normal(kx_mt, (batch_mt, layer_size[0]), dtype=jnp.float32)
    out_mt = jax.block_until_ready(
        mlp_forward_fused(x_mt, params, ACTIVATION, tb=16))
    ref_mt = mlp_reference(x_mt, params)
    assert out_mt.shape == (batch_mt, layer_size[-1])
    assert jnp.allclose(out_mt, ref_mt, atol=1e-5, rtol=1e-5), "fused-tiled mismatch"

    # --- larger MLP: tiled per-layer path (exercises M/N/K grid + accumulator)
    layer_size2 = [640, 512, 128]
    batch2 = 320
    key, kx2 = jax.random.split(key)
    x2 = jax.random.normal(kx2, (batch2, layer_size2[0]), dtype=jnp.float32)
    key, kp2 = jax.random.split(key)
    params2 = init_mlp_params(kp2, layer_size2)

    out2 = jax.block_until_ready(
        mlp_forward_jit(x2, params2, force_tiled=True))
    ref2 = mlp_reference(x2, params2)
    assert out2.shape == (batch2, layer_size2[-1])
    assert jnp.allclose(out2, ref2, atol=5e-4, rtol=5e-4), "tiled path mismatch"

    print("KERNEL_OK")
</pallas_src>

<mosaic_0001>
module attributes {stable_mosaic.version = 11 : i64} {
  func.func @_fused_mlp_kernel(%arg0: i32, %arg1: memref<8x128xf32, #tpu.memory_space<vmem>>, %arg2: memref<128x128xf32, #tpu.memory_space<vmem>>, %arg3: memref<1x128xf32, #tpu.memory_space<vmem>>, %arg4: memref<128x128xf32, #tpu.memory_space<vmem>>, %arg5: memref<1x128xf32, #tpu.memory_space<vmem>>, %arg6: memref<128x128xf32, #tpu.memory_space<vmem>>, %arg7: memref<1x128xf32, #tpu.memory_space<vmem>>, %arg8: memref<8x128xf32, #tpu.memory_space<vmem>>) attributes {dimension_semantics = [#tpu.dimension_semantics<parallel>], iteration_bounds = array<i64: 1>, scalar_prefetch = 0 : i64, scratch_operands = 0 : i64, tpu.core_type = #tpu.core_type<tc>, window_params = [{transform_indices = @transform_0, window_bounds = array<i64: 8, 128>}, {pipeline_mode = #tpu.pipeline_mode<synchronous>, transform_indices = @transform_1, window_bounds = array<i64: 128, 128>}, {pipeline_mode = #tpu.pipeline_mode<synchronous>, transform_indices = @transform_2, window_bounds = array<i64: 1, 128>}, {pipeline_mode = #tpu.pipeline_mode<synchronous>, transform_indices = @transform_3, window_bounds = array<i64: 128, 128>}, {pipeline_mode = #tpu.pipeline_mode<synchronous>, transform_indices = @transform_4, window_bounds = array<i64: 1, 128>}, {pipeline_mode = #tpu.pipeline_mode<synchronous>, transform_indices = @transform_5, window_bounds = array<i64: 128, 128>}, {pipeline_mode = #tpu.pipeline_mode<synchronous>, transform_indices = @transform_6, window_bounds = array<i64: 1, 128>}, {transform_indices = @transform_7, window_bounds = array<i64: 8, 128>}]} {
    %c0 = arith.constant 0 : index
    %c0_0 = arith.constant 0 : index
    %0 = vector.load %arg1[%c0, %c0_0] : memref<8x128xf32, #tpu.memory_space<vmem>>, vector<8x128xf32>
    %c0_1 = arith.constant 0 : index
    %c0_2 = arith.constant 0 : index
    %1 = vector.load %arg2[%c0_1, %c0_2] : memref<128x128xf32, #tpu.memory_space<vmem>>, vector<128x128xf32>
    %cst = arith.constant dense<0.000000e+00> : vector<8x128xf32>
    %2 = tpu.matmul %0, %1, %cst {dimension_numbers = #tpu.dot_dimension_numbers<[1], [0], [0], [1], [0, 0, 1, 1], [], []>} : vector<8x128xf32>, vector<128x128xf32>, vector<8x128xf32> -> vector<8x128xf32>
    %c0_3 = arith.constant 0 : index
    %c0_4 = arith.constant 0 : index
    %3 = vector.load %arg3[%c0_3, %c0_4] : memref<1x128xf32, #tpu.memory_space<vmem>>, vector<1x128xf32>
    %4 = vector.broadcast %3 : vector<1x128xf32> to vector<8x128xf32>
    %5 = arith.addf %2, %4 : vector<8x128xf32>
    %6 = math.tanh %5 : vector<8x128xf32>
    %c0_5 = arith.constant 0 : index
    %c0_6 = arith.constant 0 : index
    %7 = vector.load %arg4[%c0_5, %c0_6] : memref<128x128xf32, #tpu.memory_space<vmem>>, vector<128x128xf32>
    %cst_7 = arith.constant dense<0.000000e+00> : vector<8x128xf32>
    %8 = tpu.matmul %6, %7, %cst_7 {dimension_numbers = #tpu.dot_dimension_numbers<[1], [0], [0], [1], [0, 0, 1, 1], [], []>} : vector<8x128xf32>, vector<128x128xf32>, vector<8x128xf32> -> vector<8x128xf32>
    %c0_8 = arith.constant 0 : index
    %c0_9 = arith.constant 0 : index
    %9 = vector.load %arg5[%c0_8, %c0_9] : memref<1x128xf32, #tpu.memory_space<vmem>>, vector<1x128xf32>
    %10 = vector.broadcast %9 : vector<1x128xf32> to vector<8x128xf32>
    %11 = arith.addf %8, %10 : vector<8x128xf32>
    %12 = math.tanh %11 : vector<8x128xf32>
    %c0_10 = arith.constant 0 : index
    %c0_11 = arith.constant 0 : index
    %13 = vector.load %arg6[%c0_10, %c0_11] : memref<128x128xf32, #tpu.memory_space<vmem>>, vector<128x128xf32>
    %cst_12 = arith.constant dense<0.000000e+00> : vector<8x128xf32>
    %14 = tpu.matmul %12, %13, %cst_12 {dimension_numbers = #tpu.dot_dimension_numbers<[1], [0], [0], [1], [0, 0, 1, 1], [], []>} : vector<8x128xf32>, vector<128x128xf32>, vector<8x128xf32> -> vector<8x128xf32>
    %c0_13 = arith.constant 0 : index
    %c0_14 = arith.constant 0 : index
    %15 = vector.load %arg7[%c0_13, %c0_14] : memref<1x128xf32, #tpu.memory_space<vmem>>, vector<1x128xf32>
    %16 = vector.broadcast %15 : vector<1x128xf32> to vector<8x128xf32>
    %17 = arith.addf %14, %16 : vector<8x128xf32>
    %c0_15 = arith.constant 0 : index
    %c0_16 = arith.constant 0 : index
    %18 = vector.load %arg8[%c0_15, %c0_16] : memref<8x128xf32, #tpu.memory_space<vmem>>, vector<8x128xf32>
    tpu.vector_store %arg8[%c0_15, %c0_16], %17 {strides = array<i32>} : memref<8x128xf32, #tpu.memory_space<vmem>>, vector<8x128xf32>,
    return
  }
  func.func @transform_0(%arg0: i32) -> (i32, i32) {
    %c0_i32 = arith.constant 0 : i32
    %c0_i32_0 = arith.constant 0 : i32
    return %arg0, %c0_i32 : i32, i32
  }
  func.func @transform_1(%arg0: i32) -> (i32, i32) {
    %c0_i32 = arith.constant 0 : i32
    %c0_i32_0 = arith.constant 0 : i32
    %c0_i32_1 = arith.constant 0 : i32
    return %c0_i32, %c0_i32_0 : i32, i32
  }
  func.func @transform_2(%arg0: i32) -> (i32, i32) {
    %c0_i32 = arith.constant 0 : i32
    %c0_i32_0 = arith.constant 0 : i32
    %c0_i32_1 = arith.constant 0 : i32
    return %c0_i32, %c0_i32_0 : i32, i32
  }
  func.func @transform_3(%arg0: i32) -> (i32, i32) {
    %c0_i32 = arith.constant 0 : i32
    %c0_i32_0 = arith.constant 0 : i32
    %c0_i32_1 = arith.constant 0 : i32
    return %c0_i32, %c0_i32_0 : i32, i32
  }
  func.func @transform_4(%arg0: i32) -> (i32, i32) {
    %c0_i32 = arith.constant 0 : i32
    %c0_i32_0 = arith.constant 0 : i32
    %c0_i32_1 = arith.constant 0 : i32
    return %c0_i32, %c0_i32_0 : i32, i32
  }
  func.func @transform_5(%arg0: i32) -> (i32, i32) {
    %c0_i32 = arith.constant 0 : i32
    %c0_i32_0 = arith.constant 0 : i32
    %c0_i32_1 = arith.constant 0 : i32
    return %c0_i32, %c0_i32_0 : i32, i32
  }
  func.func @transform_6(%arg0: i32) -> (i32, i32) {
    %c0_i32 = arith.constant 0 : i32
    %c0_i32_0 = arith.constant 0 : i32
    %c0_i32_1 = arith.constant 0 : i32
    return %c0_i32, %c0_i32_0 : i32, i32
  }
  func.func @transform_7(%arg0: i32) -> (i32, i32) {
    %c0_i32 = arith.constant 0 : i32
    %c0_i32_0 = arith.constant 0 : i32
    return %arg0, %c0_i32 : i32, i32
  }
}

</mosaic_0001>

<bundles_post_ra>
// kernel: mlp_forward.1
= control target key start
LH: loop header
LB: loop body
LE: loop exit
PB: predicated region body
PF: predicated region fallthrough
CT: control target
= control target key end

     0   :  { %v587_v3 = vmov 0.0|0.0   ;;  %vm588_vm0 = vmmov 0   ;;  %v589_v6 = vmov 0.0   ;;  %s829_s0 = inlined_call_operand.vmem [shape: f32[8,128], index: 0, kind: input, shape index: {}]   ;;  %s830_s1 = inlined_call_operand.vmem [shape: f32[128,128], index: 1, kind: input, shape index: {}]   ;;  %s831_s2 = inlined_call_operand.vmem [shape: f32[1,128], index: 2, kind: input, shape index: {}]   ;;  %s832_s3 = inlined_call_operand.vmem [shape: f32[128,128], index: 3, kind: input, shape index: {}]   ;;  %s833_s4 = inlined_call_operand.vmem [shape: f32[1,128], index: 4, kind: input, shape index: {}]   ;;  %s834_s5 = inlined_call_operand.vmem [shape: f32[128,128], index: 5, kind: input, shape index: {}]   ;;  %s835_s6 = inlined_call_operand.vmem [shape: f32[1,128], index: 6, kind: input, shape index: {}]   ;;  %s836_s7 = inlined_call_operand.hbm [shape: f32[8,128], index: 7, kind: output, shape index: {}]  }
   0x1   :  { %v28_v0 = vld [vmem:[%s830_s1] sm:$0xff]  ;;  %v29_v1 = vld [vmem:[%s830_s1 + $0x8] sm:$0xff]  ;;  %v30_v2 = vld [vmem:[%s830_s1 + $0x10] sm:$0xff]  ;;  %483 = vmatprep.subr.bf16.mxu0 %v587_v3  ;;  %410 = vmatprep.mubr.msk.f32.mxu0 %vm588_vm0, %v589_v6 }
   0x2   :  { %v484_v4 = vpack.c.bf16 %v29_v1, %v28_v0  ;;  %v31_v5 = vld [vmem:[%s830_s1 + $0x18] sm:$0xff]  ;;  %507 = vmatprep.subr.bf16.mxu1 %v587_v3  ;;  %445 = vmatprep.mubr.msk.f32.mxu1 %vm588_vm0, %v589_v6  ;;  %v32_v8 = vld [vmem:[%s830_s1 + $0x20] sm:$0xff]  ;;  %v33_v9 = vld [vmem:[%s830_s1 + $0x28] sm:$0xff] }
   0x3   :  { %v487_v7 = vpack.c.bf16 %v31_v5, %v30_v2  ;;  %v122_v10 = vld [vmem:[%s832_s3] sm:$0xff]  ;;  %v123_v11 = vld [vmem:[%s832_s3 + $0x8] sm:$0xff]  ;;  %v124_v12 = vld [vmem:[%s832_s3 + $0x10] sm:$0xff]  ;;  %v490_v14 = vpack.c.bf16 %v33_v9, %v32_v8 }
   0x4   :  { %485 = vmatpush3.bf16.msra.mxu0 %v484_v4  ;;  %v125_v13 = vld [vmem:[%s832_s3 + $0x18] sm:$0xff]  ;;  %v508_v15 = vpack.c.bf16 %v123_v11, %v122_v10  ;;  %v34_v16 = vld [vmem:[%s830_s1 + $0x30] sm:$0xff] }
   0x5   :  { %486 = vmatprep.subr.bf16.mxu0 %v587_v3  ;;  %v35_v17 = vld [vmem:[%s830_s1 + $0x38] sm:$0xff]  ;;  %v511_v18 = vpack.c.bf16 %v125_v13, %v124_v12 }
   0x6   :  { %509 = vmatpush3.bf16.msra.mxu1 %v508_v15 }
   0x8   :  { %488 = vmatpush3.bf16.msra.mxu0 %v487_v7 }
   0x9   :  { %489 = vmatprep.subr.bf16.mxu0 %v587_v3 }
   0xa   :  { %12 = vsyncpa [#allocation3], 0  ;;  %510 = vmatprep.subr.bf16.mxu1 %v587_v3  ;;  %v126_v19 = vld [vmem:[%s832_s3 + $0x20] sm:$0xff]  ;;  %v127_v20 = vld [vmem:[%s832_s3 + $0x28] sm:$0xff]  ;;  %v493_v21 = vpack.c.bf16 %v35_v17, %v34_v16 }
   0xb   :  { %v36_v22 = vld [vmem:[%s830_s1 + $0x40] sm:$0xff]  ;;  %v37_v23 = vld [vmem:[%s830_s1 + $0x48] sm:$0xff]  ;;  %512 = vmatpush3.bf16.msra.mxu1 %v511_v18  ;;  %v514_v24 = vpack.c.bf16 %v127_v20, %v126_v19  ;;  %v128_v25 = vld [vmem:[%s832_s3 + $0x30] sm:$0xff] }
   0xc   :  { %491 = vmatpush3.bf16.msra.mxu0 %v490_v14  ;;  %513 = vmatprep.subr.bf16.mxu1 %v587_v3  ;;  %v129_v26 = vld [vmem:[%s832_s3 + $0x38] sm:$0xff]  ;;  %v496_v27 = vpack.c.bf16 %v37_v23, %v36_v22  ;;  %v38_v28 = vld [vmem:[%s830_s1 + $0x50] sm:$0xff]  ;;  %v130_v31 = vld [vmem:[%s832_s3 + $0x40] sm:$0xff] }
   0xd   :  { %492 = vmatprep.subr.bf16.mxu0 %v587_v3  ;;  %v39_v29 = vld [vmem:[%s830_s1 + $0x58] sm:$0xff]  ;;  %v517_v30 = vpack.c.bf16 %v129_v26, %v128_v25  ;;  %v131_v32 = vld [vmem:[%s832_s3 + $0x48] sm:$0xff]  ;;  %v40_v34 = vld [vmem:[%s830_s1 + $0x60] sm:$0xff] }
   0xe   :  { %v499_v33 = vpack.c.bf16 %v39_v29, %v38_v28  ;;  %v41_v35 = vld [vmem:[%s830_s1 + $0x68] sm:$0xff]  ;;  %v520_v36 = vpack.c.bf16 %v131_v32, %v130_v31  ;;  %v42_v38 = vld [vmem:[%s830_s1 + $0x70] sm:$0xff]  ;;  %v43_v39 = vld [vmem:[%s830_s1 + $0x78] sm:$0xff] }
   0xf   :  { %515 = vmatpush3.bf16.msra.mxu1 %v514_v24  ;;  %v502_v37 = vpack.c.bf16 %v41_v35, %v40_v34  ;;  %v505_v40 = vpack.c.bf16 %v43_v39, %v42_v38  ;;  %v27_v41 = vld [vmem:[%s829_s0] sm:$0xff]  ;;  %v132_v42 = vld [vmem:[%s832_s3 + $0x50] sm:$0xff]  ;;  %v133_v43 = vld [vmem:[%s832_s3 + $0x58] sm:$0xff] }
  0x10   :  { %494 = vmatpush3.bf16.msra.mxu0 %v493_v21  ;;  %516 = vmatprep.subr.bf16.mxu1 %v587_v3  ;;  %v523_v44 = vpack.c.bf16 %v133_v43, %v132_v42  ;;  %v134_v45 = vld [vmem:[%s832_s3 + $0x60] sm:$0xff]  ;;  %v135_v46 = vld [vmem:[%s832_s3 + $0x68] sm:$0xff]  ;;  %v136_v48 = vld [vmem:[%s832_s3 + $0x70] sm:$0xff] }
  0x11   :  { %495 = vmatprep.subr.bf16.mxu0 %v587_v3  ;;  %v526_v47 = vpack.c.bf16 %v135_v46, %v134_v45  ;;  %v137_v49 = vld [vmem:[%s832_s3 + $0x78] sm:$0xff]  ;;  %v216_v51 = vld [vmem:[%s834_s5] sm:$0xff]  ;;  %v217_v52 = vld [vmem:[%s834_s5 + $0x8] sm:$0xff] }
  0x12   :  { %v529_v50 = vpack.c.bf16 %v137_v49, %v136_v48  ;;  %v218_v53 = vld [vmem:[%s834_s5 + $0x10] sm:$0xff]  ;;  %v532_v54 = vpack.c.bf16 %v217_v52, %v216_v51  ;;  %v219_v55 = vld [vmem:[%s834_s5 + $0x18] sm:$0xff]  ;;  %v220_v57 = vld [vmem:[%s834_s5 + $0x20] sm:$0xff] }
  0x13   :  { %518 = vmatpush3.bf16.msra.mxu1 %v517_v30  ;;  %v535_v56 = vpack.c.bf16 %v219_v55, %v218_v53  ;;  %v221_v58 = vld [vmem:[%s834_s5 + $0x28] sm:$0xff]  ;;  %v222_v60 = vld [vmem:[%s834_s5 + $0x30] sm:$0xff]  ;;  %v223_v61 = vld [vmem:[%s834_s5 + $0x38] sm:$0xff] }
  0x14   :  { %497 = vmatpush3.bf16.msra.mxu0 %v496_v27  ;;  %519 = vmatprep.subr.bf16.mxu1 %v587_v3  ;;  %v538_v59 = vpack.c.bf16 %v221_v58, %v220_v57  ;;  %v541_v62 = vpack.c.bf16 %v223_v61, %v222_v60  ;;  %v224_v63 = vld [vmem:[%s834_s5 + $0x40] sm:$0xff]  ;;  %v225_v0 = vld [vmem:[%s834_s5 + $0x48] sm:$0xff]  ;;  %v226_v8 = vld [vmem:[%s834_s5 + $0x50] sm:$0xff] }
  0x15   :  { %498 = vmatprep.subr.bf16.mxu0 %v587_v3  ;;  %v544_v1 = vpack.c.bf16 %v225_v0, %v224_v63  ;;  %v324_v2 = vld [vmem:[%s831_s2] ss:$0 sm:$0xff]  ;;  %v227_v9 = vld [vmem:[%s834_s5 + $0x58] sm:$0xff]  ;;  %v229_v12 = vld [vmem:[%s834_s5 + $0x68] sm:$0xff] }
  0x16   :  { %v547_v10 = vpack.c.bf16 %v227_v9, %v226_v8  ;;  %v228_v11 = vld [vmem:[%s834_s5 + $0x60] sm:$0xff]  ;;  %v230_v14 = vld [vmem:[%s834_s5 + $0x70] sm:$0xff]  ;;  %v231_v15 = vld [vmem:[%s834_s5 + $0x78] sm:$0xff]  ;;  %s590_s5 = smov [#allocation2]  }
  0x17   :  { %521 = vmatpush3.bf16.msra.mxu1 %v520_v36  ;;  %v550_v13 = vpack.c.bf16 %v229_v12, %v228_v11  ;;  %v553_v16 = vpack.c.bf16 %v231_v15, %v230_v14  ;;  %v325_v17 = vld [vmem:[%s833_s4] ss:$0 sm:$0xff]  ;;  %s316_s29 = sshll.u32 %s590_s5, 4  ;;  %s317_s29 = int_to_ptr.vmem [resolvable:$true] %s316_s29 }
  0x18   :  { %500 = vmatpush3.bf16.msra.mxu0 %v499_v33  ;;  %522 = vmatprep.subr.bf16.mxu1 %v587_v3  ;;  %v326_v22 = vld [vmem:[%s835_s6] ss:$0 sm:$0xff]  ;;  %s563_s30 = scalar_lea.vmem %s317_s29, 128  ;;  %p568_p1 = scmp.lt.s32.totalorder %s317_s29, %s317_s29 }
  0x19   :  { %501 = vmatprep.subr.bf16.mxu0 %v587_v3  ;;  %p564_p0 = scmp.ne.s32.totalorder %s317_s29, %s563_s30  ;;  %p569_p2 = scmp.lt.s32.totalorder %s563_s30, %s563_s30 }
  0x1b   :  { %524 = vmatpush3.bf16.msra.mxu1 %v523_v44  ;;  %p570_p3 = por %p569_p2, %p568_p1 }
  0x1c   :  { %503 = vmatpush3.bf16.msra.mxu0 %v502_v37  ;;  %525 = vmatprep.subr.bf16.mxu1 %v587_v3 }
  0x1d   :  { %504 = vmatprep.subr.bf16.mxu0 %v587_v3  ;;  %p571_p4 = pnand %p570_p3, %p564_p0 }
  0x1f   :  { %527 = vmatpush3.bf16.msra.mxu1 %v526_v47 }
  0x20   :  { %506 = vmatpush3.bf16.msra.mxu0 %v505_v40  ;;  %528 = vmatprep.subr.bf16.mxu1 %v587_v3 }
  0x21   :  { %531 = vmatprep.subr.bf16.mxu0 %v587_v3 }
  0x23   :  { %411 = vmatmul.mubr.f32.vlgmr.msra.gmra.mrb[0].mxu0 %v27_v41  ;;  %530 = vmatpush3.bf16.msra.mxu1 %v529_v50 }
  0x24   :  { %480 = vmatprep.mubr.msk.f32.mxu0 %vm588_vm0, %v589_v6  ;;  %533 = vmatpush3.bf16.msra.mxu0 %v532_v54 }
  0x25   :  { %534 = vmatprep.subr.bf16.mxu0 %v587_v3 }
  0x28   :  { %536 = vmatpush3.bf16.msra.mxu0 %v535_v56 }
  0x29   :  { %537 = vmatprep.subr.bf16.mxu0 %v587_v3 }
  0x2c   :  { %539 = vmatpush3.bf16.msra.mxu0 %v538_v59 }
  0x2d   :  { %540 = vmatprep.subr.bf16.mxu0 %v587_v3 }
  0x30   :  { %542 = vmatpush3.bf16.msra.mxu0 %v541_v62 }
  0x31   :  { %543 = vmatprep.subr.bf16.mxu0 %v587_v3 }
  0x34   :  { %545 = vmatpush3.bf16.msra.mxu0 %v544_v1 }
  0x35   :  { %546 = vmatprep.subr.bf16.mxu0 %v587_v3 }
  0x38   :  { %548 = vmatpush3.bf16.msra.mxu0 %v547_v10 }
  0x39   :  { %549 = vmatprep.subr.bf16.mxu0 %v587_v3 }
  0x3c   :  { %551 = vmatpush3.bf16.msra.mxu0 %v550_v13 }
  0x3d   :  { %552 = vmatprep.subr.bf16.mxu0 %v587_v3 }
  0x40   :  { %554 = vmatpush3.bf16.msra.mxu0 %v553_v16 }
  0xf6   :  { %v117_v4 = vpop.f32.mrb[0].mxu0 }
  0xf7   :  { %v118_v5 = vadd.f32 %v324_v2, %v117_v4  ;;  %v412_v6 = vpop.f32.mrb[1].mxu0 }
  0xf9   :  { %559 = vtanh.f32 %v118_v5 }
 0x103   :  { %v560_v7 = vpop.eup %559 }
 0x104   :  { %446 = vmatmul.mubr.f32.vlgmr.msra.gmra.mrb[0].mxu1 %v560_v7 }
 0x1d7   :  { %v211_v18 = vpop.f32.mrb[0].mxu1 }
 0x1d8   :  { %v212_v19 = vadd.f32 %v325_v17, %v211_v18  ;;  %v447_v20 = vpop.f32.mrb[1].mxu1 }
 0x1da   :  { %561 = vtanh.f32 %v212_v19 }
 0x1e4   :  { %v562_v21 = vpop.eup %561 }
 0x1e5   :  { %481 = vmatmul.mubr.f32.vlgmr.msra.gmra.mrb[2].mxu0 %v562_v21 }
 0x2b8   :  { %v305_v23 = vpop.f32.mrb[2].mxu0 }
 0x2b9   :  { %v306_v24 = vadd.f32 %v326_v22, %v305_v23  ;;  %v482_v3 = vpop.f32.mrb[3].mxu0 }
 0x2bb   :  { %309 = vst [vmem:[#allocation2] sm:$0xff] %v306_v24 }
 0x2bc   :  { %574 = shalt.err (!%p571_p4)
}
 0x2bd   :  { %s575_s9 = scalar_lea.hbm %s836_s7, 128 }
 0x2be   :  { %p576_p5 = scmp.ne.s32.totalorder %s836_s7, %s575_s9  ;;  %p579_p6 = scmp.lt.u32.totalorder %s575_s9, %s836_s7 }
 0x2c0   :  { %p581_p7 = pnand %p579_p6, %p576_p5 }
 0x2c2   :  { %584 = shalt.err (!%p581_p7)
}
 0x2c3   :  { %319 = dma.vmem_to_hbm [thread:$0]  %s317_s29, 128, %s836_s7, [#allocation3]  }
 0x2c4   :  { %585 = dma.done.wait [#allocation3], 128  }
 0x2c5   :  { %586 = vsyncadd [#allocation3], 4294967168 }
 0x2c6   :  { %323 = vsyncpa [#allocation3], 1 }

</bundles_post_ra>
